<compile_context>
chip_gen: v5e
topology: v5e:2x2
jax: 0.10.0
libtpu: 0.0.40
codegen_flags: <defaults>
</compile_context>

<pallas_src>
import jax
import jax.numpy as jnp
from jax.experimental import pallas as pl
from jax.experimental.pallas import tpu as pltpu

d_g = 2
hidden_size1 = 3
input_size = d_g

SUB = 8        # TPU sublane width
TB_MAX = 512   # max batch rows per grid step

# packed layout: [w1 (2x3, row-major) | b1 (3) | w3 (3x2, row-major) | b3 (2)] -> 17 floats
N_PARAMS = input_size * hidden_size1 + hidden_size1 + hidden_size1 * d_g + d_g


def _mlp_kernel(p_ref, x_ref, o_ref):
    # p_ref: (17,) f32 in SMEM;  x_ref: (TB, 2) f32;  o_ref: (TB, 2) f32
    x = x_ref[...]
    x0 = x[:, 0:1]
    x1 = x[:, 1:2]
    # hidden_j = relu(x0 * w1[0, j] + x1 * w1[1, j] + b1[j])   (VPU broadcast-FMA)
    h0 = jnp.maximum(x0 * p_ref[0] + x1 * p_ref[3] + p_ref[6], 0.0)
    h1 = jnp.maximum(x0 * p_ref[1] + x1 * p_ref[4] + p_ref[7], 0.0)
    h2 = jnp.maximum(x0 * p_ref[2] + x1 * p_ref[5] + p_ref[8], 0.0)
    # out_k = h0 * w3[0, k] + h1 * w3[1, k] + h2 * w3[2, k] + b3[k]
    o0 = h0 * p_ref[9] + h1 * p_ref[11] + h2 * p_ref[13] + p_ref[15]
    o1 = h0 * p_ref[10] + h1 * p_ref[12] + h2 * p_ref[14] + p_ref[16]
    o_ref[...] = jnp.concatenate([o0, o1], axis=1).astype(o_ref.dtype)


def pack_params(params):
    """One-time packing/casting of (w1, b1, w3, b3) -> flat (17,) f32 (hoisted off hot path)."""
    w1, b1, w3, b3 = params
    return jnp.concatenate(
        [
            w1.astype(jnp.float32).reshape(-1),
            b1.astype(jnp.float32).reshape(-1),
            w3.astype(jnp.float32).reshape(-1),
            b3.astype(jnp.float32).reshape(-1),
        ]
    )


def _round_up(n, m):
    return max(m, ((n + m - 1) // m) * m)


@jax.jit
def binary_classifier_forward(x, packed_params):
    """x: (B, input_size). packed_params: (17,) f32 from pack_params()."""
    B, D = x.shape
    assert D == input_size
    x = x.astype(jnp.float32)

    tb = min(TB_MAX, _round_up(B, SUB))   # block rows: multiple of 8, <= 512
    grid = (pl.cdiv(B, tb),)

    return pl.pallas_call(
        _mlp_kernel,
        out_shape=jax.ShapeDtypeStruct((B, d_g), jnp.float32),
        grid=grid,
        in_specs=[
            # Tiny packed parameter vector lives in SMEM, same block every step.
            pl.BlockSpec(
                (N_PARAMS,), lambda i: (0,), memory_space=pltpu.MemorySpace.SMEM
            ),
            # Unpadded activations: last dim == full extent (2), rows tiled over grid.
            pl.BlockSpec((tb, D), lambda i: (i, 0)),
        ],
        out_specs=pl.BlockSpec((tb, d_g), lambda i: (i, 0)),
        compiler_params=pltpu.CompilerParams(
            dimension_semantics=("parallel",),
        ),
    )(packed_params, x)


def init_params(key):
    """Deterministic init mimicking PyTorch nn.Linear default (uniform +-1/sqrt(fan_in))."""
    k1, k2, k3, k4 = jax.random.split(key, 4)
    bound1 = 1.0 / jnp.sqrt(float(input_size))
    bound3 = 1.0 / jnp.sqrt(float(hidden_size1))
    # Stored transposed relative to PyTorch: (in_features, out_features).
    w1 = jax.random.uniform(k1, (input_size, hidden_size1), jnp.float32, -bound1, bound1)
    b1 = jax.random.uniform(k2, (hidden_size1,), jnp.float32, -bound1, bound1)
    w3 = jax.random.uniform(k3, (hidden_size1, d_g), jnp.float32, -bound3, bound3)
    b3 = jax.random.uniform(k4, (d_g,), jnp.float32, -bound3, bound3)
    return w1, b1, w3, b3


if __name__ == "__main__":
    key = jax.random.PRNGKey(0)
    pkey, xkey = jax.random.split(key)

    params = init_params(pkey)
    packed = pack_params(params)  # done once at init, not per forward

    batch = 8
    x = jax.random.normal(xkey, (batch, input_size), jnp.float32)

    out = jax.block_until_ready(binary_classifier_forward(x, packed))

    # Reference check in plain JAX.
    w1, b1, w3, b3 = params
    ref = jnp.maximum(x @ w1 + b1, 0.0) @ w3 + b3
    assert out.shape == (batch, d_g)
    assert jnp.allclose(out, ref, atol=1e-5, rtol=1e-5)

    print("KERNEL_OK")
</pallas_src>

<mosaic_0001>
module attributes {stable_mosaic.version = 11 : i64} {
  func.func @_mlp_kernel(%arg0: i32, %arg1: memref<17xf32, #tpu.memory_space<smem>>, %arg2: memref<8x2xf32, #tpu.memory_space<vmem>>, %arg3: memref<8x2xf32, #tpu.memory_space<vmem>>) attributes {dimension_semantics = [#tpu.dimension_semantics<parallel>], iteration_bounds = array<i64: 1>, scalar_prefetch = 0 : i64, scratch_operands = 0 : i64, tpu.core_type = #tpu.core_type<tc>, window_params = [{transform_indices = @transform_0, window_bounds = array<i64: 17>}, {transform_indices = @transform_1, window_bounds = array<i64: 8, 2>}, {transform_indices = @transform_2, window_bounds = array<i64: 8, 2>}]} {
    %c0 = arith.constant 0 : index
    %c0_0 = arith.constant 0 : index
    %0 = vector.load %arg2[%c0, %c0_0] : memref<8x2xf32, #tpu.memory_space<vmem>>, vector<8x2xf32>
    %1 = vector.extract_strided_slice %0 {offsets = [0, 0], sizes = [8, 1], strides = [1, 1]} : vector<8x2xf32> to vector<8x1xf32>
    %2 = vector.extract_strided_slice %0 {offsets = [0, 1], sizes = [8, 1], strides = [1, 1]} : vector<8x2xf32> to vector<8x1xf32>
    %c0_1 = arith.constant 0 : index
    %3 = memref.load %arg1[%c0_1] : memref<17xf32, #tpu.memory_space<smem>>
    %4 = vector.broadcast %3 : f32 to vector<8x1xf32>
    %5 = arith.mulf %1, %4 : vector<8x1xf32>
    %c3 = arith.constant 3 : index
    %6 = memref.load %arg1[%c3] : memref<17xf32, #tpu.memory_space<smem>>
    %7 = vector.broadcast %6 : f32 to vector<8x1xf32>
    %8 = arith.mulf %2, %7 : vector<8x1xf32>
    %9 = arith.addf %5, %8 : vector<8x1xf32>
    %c6 = arith.constant 6 : index
    %10 = memref.load %arg1[%c6] : memref<17xf32, #tpu.memory_space<smem>>
    %11 = vector.broadcast %10 : f32 to vector<8x1xf32>
    %12 = arith.addf %9, %11 : vector<8x1xf32>
    %cst = arith.constant 0.000000e+00 : f32
    %13 = vector.broadcast %cst : f32 to vector<8x1xf32>
    %14 = arith.maximumf %12, %13 : vector<8x1xf32>
    %c1 = arith.constant 1 : index
    %15 = memref.load %arg1[%c1] : memref<17xf32, #tpu.memory_space<smem>>
    %16 = vector.broadcast %15 : f32 to vector<8x1xf32>
    %17 = arith.mulf %1, %16 : vector<8x1xf32>
    %c4 = arith.constant 4 : index
    %18 = memref.load %arg1[%c4] : memref<17xf32, #tpu.memory_space<smem>>
    %19 = vector.broadcast %18 : f32 to vector<8x1xf32>
    %20 = arith.mulf %2, %19 : vector<8x1xf32>
    %21 = arith.addf %17, %20 : vector<8x1xf32>
    %c7 = arith.constant 7 : index
    %22 = memref.load %arg1[%c7] : memref<17xf32, #tpu.memory_space<smem>>
    %23 = vector.broadcast %22 : f32 to vector<8x1xf32>
    %24 = arith.addf %21, %23 : vector<8x1xf32>
    %cst_2 = arith.constant 0.000000e+00 : f32
    %25 = vector.broadcast %cst_2 : f32 to vector<8x1xf32>
    %26 = arith.maximumf %24, %25 : vector<8x1xf32>
    %c2 = arith.constant 2 : index
    %27 = memref.load %arg1[%c2] : memref<17xf32, #tpu.memory_space<smem>>
    %28 = vector.broadcast %27 : f32 to vector<8x1xf32>
    %29 = arith.mulf %1, %28 : vector<8x1xf32>
    %c5 = arith.constant 5 : index
    %30 = memref.load %arg1[%c5] : memref<17xf32, #tpu.memory_space<smem>>
    %31 = vector.broadcast %30 : f32 to vector<8x1xf32>
    %32 = arith.mulf %2, %31 : vector<8x1xf32>
    %33 = arith.addf %29, %32 : vector<8x1xf32>
    %c8 = arith.constant 8 : index
    %34 = memref.load %arg1[%c8] : memref<17xf32, #tpu.memory_space<smem>>
    %35 = vector.broadcast %34 : f32 to vector<8x1xf32>
    %36 = arith.addf %33, %35 : vector<8x1xf32>
    %cst_3 = arith.constant 0.000000e+00 : f32
    %37 = vector.broadcast %cst_3 : f32 to vector<8x1xf32>
    %38 = arith.maximumf %36, %37 : vector<8x1xf32>
    %c9 = arith.constant 9 : index
    %39 = memref.load %arg1[%c9] : memref<17xf32, #tpu.memory_space<smem>>
    %40 = vector.broadcast %39 : f32 to vector<8x1xf32>
    %41 = arith.mulf %14, %40 : vector<8x1xf32>
    %c11 = arith.constant 11 : index
    %42 = memref.load %arg1[%c11] : memref<17xf32, #tpu.memory_space<smem>>
    %43 = vector.broadcast %42 : f32 to vector<8x1xf32>
    %44 = arith.mulf %26, %43 : vector<8x1xf32>
    %45 = arith.addf %41, %44 : vector<8x1xf32>
    %c13 = arith.constant 13 : index
    %46 = memref.load %arg1[%c13] : memref<17xf32, #tpu.memory_space<smem>>
    %47 = vector.broadcast %46 : f32 to vector<8x1xf32>
    %48 = arith.mulf %38, %47 : vector<8x1xf32>
    %49 = arith.addf %45, %48 : vector<8x1xf32>
    %c15 = arith.constant 15 : index
    %50 = memref.load %arg1[%c15] : memref<17xf32, #tpu.memory_space<smem>>
    %51 = vector.broadcast %50 : f32 to vector<8x1xf32>
    %52 = arith.addf %49, %51 : vector<8x1xf32>
    %c10 = arith.constant 10 : index
    %53 = memref.load %arg1[%c10] : memref<17xf32, #tpu.memory_space<smem>>
    %54 = vector.broadcast %53 : f32 to vector<8x1xf32>
    %55 = arith.mulf %14, %54 : vector<8x1xf32>
    %c12 = arith.constant 12 : index
    %56 = memref.load %arg1[%c12] : memref<17xf32, #tpu.memory_space<smem>>
    %57 = vector.broadcast %56 : f32 to vector<8x1xf32>
    %58 = arith.mulf %26, %57 : vector<8x1xf32>
    %59 = arith.addf %55, %58 : vector<8x1xf32>
    %c14 = arith.constant 14 : index
    %60 = memref.load %arg1[%c14] : memref<17xf32, #tpu.memory_space<smem>>
    %61 = vector.broadcast %60 : f32 to vector<8x1xf32>
    %62 = arith.mulf %38, %61 : vector<8x1xf32>
    %63 = arith.addf %59, %62 : vector<8x1xf32>
    %c16 = arith.constant 16 : index
    %64 = memref.load %arg1[%c16] : memref<17xf32, #tpu.memory_space<smem>>
    %65 = vector.broadcast %64 : f32 to vector<8x1xf32>
    %66 = arith.addf %63, %65 : vector<8x1xf32>
    %67 = tpu.concatenate %52, %66 in 1 : vector<8x1xf32>, vector<8x1xf32> -> vector<8x2xf32>
    %c0_4 = arith.constant 0 : index
    %c0_5 = arith.constant 0 : index
    %68 = vector.load %arg3[%c0_4, %c0_5] : memref<8x2xf32, #tpu.memory_space<vmem>>, vector<8x2xf32>
    tpu.vector_store %arg3[%c0_4, %c0_5], %67 {strides = array<i32>} : memref<8x2xf32, #tpu.memory_space<vmem>>, vector<8x2xf32>,
    return
  }
  func.func @transform_0(%arg0: i32) -> i32 {
    %c0_i32 = arith.constant 0 : i32
    %c0_i32_0 = arith.constant 0 : i32
    return %c0_i32 : i32
  }
  func.func @transform_1(%arg0: i32) -> (i32, i32) {
    %c0_i32 = arith.constant 0 : i32
    %c0_i32_0 = arith.constant 0 : i32
    return %arg0, %c0_i32 : i32, i32
  }
  func.func @transform_2(%arg0: i32) -> (i32, i32) {
    %c0_i32 = arith.constant 0 : i32
    %c0_i32_0 = arith.constant 0 : i32
    return %arg0, %c0_i32 : i32, i32
  }
}

</mosaic_0001>

<bundles_post_ra>
// kernel: binary_classifier_forward.1
= control target key start
LH: loop header
LB: loop body
LE: loop exit
PB: predicated region body
PF: predicated region fallthrough
CT: control target
= control target key end

     0   :  { %7 = vsyncpa [#allocation3], 0  ;;  %s144_s12 = smov [#allocation2]   ;;  %s177_s0 = inlined_call_operand.vmem [shape: f32[17], index: 0, kind: input, shape index: {}]   ;;  %s178_s1 = inlined_call_operand.vmem [shape: f32[8,2], index: 1, kind: input, shape index: {}]   ;;  %s179_s2 = inlined_call_operand.vmem [shape: f32[8,2], index: 2, kind: output, shape index: {}]  }
   0x1   :  { %s13_s11 = sshll.u32 %s177_s0, 4  ;;  %s14_s11 = int_to_ptr.vmem [resolvable:$true] %s13_s11 }
   0x2   :  { %16 = dma.vmem_to_smem %s14_s11, 16, %s144_s12, [#allocation3]  }
   0x3   :  { %142 = dma.done.wait [#allocation3], 16  }
   0x4   :  { %143 = vsyncadd [#allocation3], 4294967280 }
   0x5   :  { %23 = sfence }
   0x6   :  { %s111_s13 = sld [smem:[#allocation2 + $0x3]]  ;;  %v24_v0 = vld [vmem:[%s178_s1] sm:$0xff]  ;;  %s145_s18 = smov 127   ;;  %vm102_vm0 = vcmask 7168   ;;  %vm104_vm1 = vcmask 15360  }
   0x7   :  { %s114_s14 = sld [smem:[#allocation2 + $0x4]]  ;;  %s146_s30 = smov 1  }
   0x8   :  { %s117_s15 = sld [smem:[#allocation2 + $0x5]] }
   0x9   :  { %s25_s0 = sld [smem:[#allocation2]] }
   0xa   :  { %s116_s19 = sld [smem:[#allocation2 + $0x2]] }
   0xb   :  { %s113_s20 = sld [smem:[#allocation2 + $0x1]] }
   0xc   :  { %v29_v1 = vstv %s111_s13  ;;  %s112_s21 = sld [smem:[#allocation2 + $0x6]] }
   0xd   :  { %v30_v2 = vmul.f32 %v29_v1, %v24_v0  ;;  %v44_v5 = vstv %s114_s14  ;;  %s118_s22 = sld [smem:[#allocation2 + $0x8]] }
   0xe   :  { %v59_v3 = vstv %s117_s15  ;;  %v45_v6 = vmul.f32 %v44_v5, %v24_v0  ;;  %s168_s23 = sld [smem:[#allocation2 + $0x9]] }
   0xf   :  { %32 = vrot.lane.b32.xlu0 %v30_v2, %s145_s18  ;;  %v60_v4 = vmul.f32 %v59_v3, %v24_v0  ;;  %v26_v7 = vstv %s25_s0  ;;  %s170_s1 = sld [smem:[#allocation2 + $0xa]] }
  0x10   :  { %v56_v8 = vstv %s116_s19  ;;  %v27_v9 = vmul.f32 %v26_v7, %v24_v0  ;;  %s115_s24 = sld [smem:[#allocation2 + $0x7]] }
  0x11   :  { %62 = vrot.lane.b32.xlu1 %v60_v4, %s145_s18  ;;  %v57_v10 = vmul.f32 %v56_v8, %v24_v0  ;;  %s120_s25 = sld [smem:[#allocation2 + $0xb]]  ;;  %v41_v13 = vstv %s113_s20 }
  0x12   :  { %s124_s26 = sld [smem:[#allocation2 + $0xc]]  ;;  %v37_v15 = vstv %s112_s21  ;;  %v42_v18 = vmul.f32 %v41_v13, %v24_v0 }
  0x13   :  { %s121_s27 = sld [smem:[#allocation2 + $0xd]]  ;;  %v67_v17 = vstv %s118_s22 }
  0x14   :  { %s125_s28 = sld [smem:[#allocation2 + $0xe]]  ;;  %v71_v25 = vstv %s168_s23 }
  0x15   :  { %s126_s29 = sld [smem:[#allocation2 + $0x10]]  ;;  %v85_v26 = vstv %s170_s1 }
  0x16   :  { %v52_v21 = vstv %s115_s24  ;;  %s122_s3 = sld [smem:[#allocation2 + $0xf]] }
  0x17   :  { %47 = vrot.lane.b32.xlu0 %v45_v6, %s145_s18  ;;  %v74_v29 = vstv %s120_s25 }
  0x18   :  { %v88_v30 = vstv %s124_s26 }
  0x19   :  { %v78_v31 = vstv %s121_s27 }
  0x1a   :  { %v92_v32 = vstv %s125_s28 }
  0x1b   :  { %v96_v42 = vstv %s126_s29 }
  0x1c   :  { %v82_v46 = vstv %s122_s3 }
  0x81   :  { %v33_v11 = vpop.permute.xlu0 %32 }
  0x82   :  { %v35_v12 = vadd.f32 %v33_v11, %v27_v9 }
  0x83   :  { %v63_v14 = vpop.permute.xlu1 %62 }
  0x84   :  { %v65_v16 = vadd.f32 %v63_v14, %v57_v10  ;;  %v38_v19 = vadd.f32 %v37_v15, %v35_v12 }
  0x86   :  { %v68_v20 = vadd.f32 %v67_v17, %v65_v16  ;;  %v39_v24 = vmax.f32 %v38_v19, 0.0 }
  0x88   :  { %v69_v28 = vmax.f32 %v68_v20, 0.0  ;;  %v72_v34 = vmul.f32 %v71_v25, %v39_v24  ;;  %v86_v35 = vmul.f32 %v85_v26, %v39_v24 }
  0x89   :  { %v48_v22 = vpop.permute.xlu0 %47 }
  0x8a   :  { %v50_v23 = vadd.f32 %v48_v22, %v42_v18  ;;  %v79_v38 = vmul.f32 %v78_v31, %v69_v28  ;;  %v93_v39 = vmul.f32 %v92_v32, %v69_v28 }
  0x8c   :  { %v53_v27 = vadd.f32 %v52_v21, %v50_v23 }
  0x8e   :  { %v54_v33 = vmax.f32 %v53_v27, 0.0 }
  0x90   :  { %v75_v36 = vmul.f32 %v74_v29, %v54_v33  ;;  %v89_v37 = vmul.f32 %v88_v30, %v54_v33 }
  0x92   :  { %v76_v40 = vadd.f32 %v75_v36, %v72_v34  ;;  %v90_v41 = vadd.f32 %v89_v37, %v86_v35 }
  0x94   :  { %v80_v43 = vadd.f32 %v79_v38, %v76_v40  ;;  %v94_v44 = vadd.f32 %v93_v39, %v90_v41 }
  0x96   :  { %v97_v45 = vadd.f32 %v96_v42, %v94_v44  ;;  %v83_v47 = vadd.f32 %v82_v46, %v80_v43 }
  0x98   :  { %99 = vrot.lane.b32.xlu1 %v97_v45, %s146_s30 }
 0x10a   :  { %v100_v48 = vpop.permute.xlu1 %99 }
 0x10b   :  { %v103_v49 = vsel %vm102_vm0, %v83_v47, %v100_v48 }
 0x10c   :  { %105 = vst.msk [vmem:[%s179_s2] sm:$0xff] %vm104_vm1, %v103_v49 }
 0x10d   :  { %110 = vsyncpa [#allocation3], 1 }

</bundles_post_ra>
